<compile_context>
chip_gen: v6e
topology: v6e:2x2x1
jax: 0.10.0
libtpu: 0.0.40
codegen_flags: <defaults>
</compile_context>

<pallas_src>
import jax
import jax.numpy as jnp
from jax.experimental import pallas as pl
from jax.experimental.pallas import tpu as pltpu


_LANE = 128
_SUBLANE_PACK = 32                      # multiple of 32 -> legal f32/bf16/int8 sublane packing
_LANE_PAD = 8 * _LANE                   # pad ragged totals to a multiple of (8, 128)
_MAX_LANE_WIDTH = 4096                  # widen lane axis for long unmasked vst/vld runs
_TILE_BYTES = 4 * 1024 * 1024           # target (in + out) bytes per grid step
_VMEM_LIMIT_BYTES = 32 * 1024 * 1024    # safe under v7x's 64 MiB physical VMEM
_MIN_GRID_STEPS = 8                     # keep the pipeline + v7x megacore fed
_SMALL_BYTES = 256 * 1024               # below this, skip Pallas entirely


def _cast_kernel(x_ref, o_ref):
    o_ref[...] = x_ref[...].astype(o_ref.dtype)


def _choose_lane_width(total):
    """Widest lane-dense N (multiple of 128, <= _MAX_LANE_WIDTH) dividing `total`."""
    n = _LANE
    while n * 2 <= _MAX_LANE_WIDTH and total % (n * 2) == 0:
        n *= 2
    return n


def _round_down(v, m):
    return (v // m) * m


def _round_up(v, m):
    return -(-v // m) * m


def _choose_row_tile(m, n, in_bytes, out_bytes):
    """Sublane-aligned row tile: ~_TILE_BYTES/step, >= _MIN_GRID_STEPS steps, even step count."""
    if m <= 2 * _SUBLANE_PACK:
        return m
    per_row = max(n * (in_bytes + out_bytes), 1)
    tm_budget = max(_round_down(_TILE_BYTES // per_row, _SUBLANE_PACK), _SUBLANE_PACK)
    tm_split = max(_round_down(m // _MIN_GRID_STEPS, _SUBLANE_PACK), _SUBLANE_PACK)
    tm = min(tm_budget, tm_split, m)
    # v7x megacore: prefer an even number of grid steps so both TensorCores stay busy.
    steps = pl.cdiv(m, tm)
    if steps % 2 == 1:
        alt = _round_up(pl.cdiv(m, steps + 1), _SUBLANE_PACK)
        if alt >= _SUBLANE_PACK and pl.cdiv(m, alt) % 2 == 0:
            tm = alt
    return tm


def pallas_cast(x, dtype):
    """Equivalent of torch Tensor.to(dtype): elementwise dtype conversion."""
    dtype = jnp.dtype(dtype)
    total = x.size
    if total == 0:
        return x.astype(dtype)

    in_bytes = x.dtype.itemsize
    out_bytes = dtype.itemsize

    # Tiny tensors: fixed pallas_call overhead dominates, XLA convert is faster.
    if total * max(in_bytes, out_bytes) < _SMALL_BYTES:
        return x.astype(dtype)

    flat = x.reshape(-1)
    pad = 0
    if total % _LANE != 0:
        # Pad up to a multiple of (8, 128) so every store stays a full-lane vst.
        padded_total = _round_up(total, _LANE_PAD)
        pad = padded_total - total
        flat = jnp.pad(flat, (0, pad))
    padded_total = total + pad

    N = _choose_lane_width(padded_total)
    M = padded_total // N
    x2 = flat.reshape(M, N)

    tm = _choose_row_tile(M, N, in_bytes, out_bytes)
    grid = (pl.cdiv(M, tm),)

    out2 = pl.pallas_call(
        _cast_kernel,
        out_shape=jax.ShapeDtypeStruct((M, N), dtype),
        grid_spec=pltpu.PrefetchScalarGridSpec(
            num_scalar_prefetch=0,
            grid=grid,
            in_specs=[pl.BlockSpec((tm, N), lambda i: (i, 0))],
            out_specs=pl.BlockSpec((tm, N), lambda i: (i, 0)),
        ),
        compiler_params=pltpu.CompilerParams(
            dimension_semantics=("parallel",),
            vmem_limit_bytes=_VMEM_LIMIT_BYTES,
        ),
        cost_estimate=pl.CostEstimate(
            flops=0,                      # a cast is not a FLOP
            transcendentals=0,
            bytes_accessed=padded_total * (in_bytes + out_bytes),
        ),
    )(x2)

    out_flat = out2.reshape(-1)
    if pad:
        out_flat = out_flat[:total]
    return out_flat.reshape(x.shape)


class TensorToPallas:
    """Mirror of torchoutil TensorTo(**kwargs): forward(x) == x.to(**kwargs)."""

    def __init__(self, **kwargs):
        self.kwargs = dict(kwargs)

    def __call__(self, x):
        kwargs = dict(self.kwargs)
        dtype = kwargs.pop("dtype", None)
        copy = bool(kwargs.pop("copy", False))
        kwargs.pop("non_blocking", None)   # no-op for a TPU kernel
        kwargs.pop("device", None)         # placement handled by XLA
        kwargs.pop("memory_format", None)  # layout handled by XLA

        if dtype is None:
            dtype = x.dtype
        dtype = jnp.dtype(dtype)
        if dtype == x.dtype and not copy:
            return x                       # torch .to() returns self when nothing changes
        return pallas_cast(x, dtype)


if __name__ == "__main__":
    key = jax.random.PRNGKey(0)
    k1, k2, k3 = jax.random.split(key, 3)

    # 1) Small module-shaped input (2, 4, 16, 16): semantics check (fast bailout path).
    x_small = jax.random.normal(k1, (2, 4, 16, 16), dtype=jnp.float32)
    mod = TensorToPallas(dtype=jnp.bfloat16)
    y_small = jax.block_until_ready(mod(x_small))
    assert y_small.shape == x_small.shape and y_small.dtype == jnp.bfloat16
    assert jnp.array_equal(y_small, x_small.astype(jnp.bfloat16))

    # 2) Lane-dense slab large enough for the Pallas kernel path (f32 -> bf16).
    x_big = jax.random.normal(k2, (256, 2048), dtype=jnp.float32)
    y_big = jax.block_until_ready(mod(x_big))
    assert y_big.shape == x_big.shape and y_big.dtype == jnp.bfloat16
    assert jnp.array_equal(y_big, x_big.astype(jnp.bfloat16))

    # 3) Ragged element count (not a multiple of 128): exercises the pad+slice path.
    x_ragged = jax.random.normal(k3, (257, 1023), dtype=jnp.float32)
    y_ragged = jax.block_until_ready(mod(x_ragged))
    assert y_ragged.shape == x_ragged.shape and y_ragged.dtype == jnp.bfloat16
    assert jnp.array_equal(y_ragged, x_ragged.astype(jnp.bfloat16))

    # 4) Cast back up with copy=True (forces a real conversion/copy).
    mod_up = TensorToPallas(dtype=jnp.float32, copy=True)
    z_big = jax.block_until_ready(mod_up(y_big))
    assert z_big.dtype == jnp.float32
    assert jnp.array_equal(z_big, y_big.astype(jnp.float32))

    # 5) Same-dtype .to() returns the input unchanged (torch semantics).
    mod_same = TensorToPallas(dtype=jnp.float32)
    w = mod_same(x_small)
    assert w is x_small

    print("KERNEL_OK")
</pallas_src>

<mosaic_0001>
module attributes {stable_mosaic.version = 11 : i64} {
  func.func @_cast_kernel(%arg0: i32, %arg1: memref<32x4096xf32, #tpu.memory_space<vmem>>, %arg2: memref<32x4096xbf16, #tpu.memory_space<vmem>>) attributes {dimension_semantics = [#tpu.dimension_semantics<parallel>], iteration_bounds = array<i64: 4>, scalar_prefetch = 0 : i64, scratch_operands = 0 : i64, tpu.core_type = #tpu.core_type<tc>, window_params = [{transform_indices = @transform_0, window_bounds = array<i64: 32, 4096>}, {transform_indices = @transform_1, window_bounds = array<i64: 32, 4096>}]} {
    %c0 = arith.constant 0 : index
    %c0_0 = arith.constant 0 : index
    %0 = vector.load %arg1[%c0, %c0_0] : memref<32x4096xf32, #tpu.memory_space<vmem>>, vector<32x4096xf32>
    %1 = arith.truncf %0 : vector<32x4096xf32> to vector<32x4096xbf16>
    %c0_1 = arith.constant 0 : index
    %c0_2 = arith.constant 0 : index
    %2 = vector.load %arg2[%c0_1, %c0_2] : memref<32x4096xbf16, #tpu.memory_space<vmem>>, vector<32x4096xbf16>
    tpu.vector_store %arg2[%c0_1, %c0_2], %1 {strides = array<i32>} : memref<32x4096xbf16, #tpu.memory_space<vmem>>, vector<32x4096xbf16>,
    return
  }
  func.func @transform_0(%arg0: i32) -> (i32, i32) {
    %c0_i32 = arith.constant 0 : i32
    %c0_i32_0 = arith.constant 0 : i32
    return %arg0, %c0_i32 : i32, i32
  }
  func.func @transform_1(%arg0: i32) -> (i32, i32) {
    %c0_i32 = arith.constant 0 : i32
    %c0_i32_0 = arith.constant 0 : i32
    return %arg0, %c0_i32 : i32, i32
  }
}

</mosaic_0001>

<bundles_post_ra>
// kernel: tpu_custom_call.1
= control target key start
LH: loop header
LB: loop body
LE: loop exit
PB: predicated region body
PF: predicated region fallthrough
CT: control target
= control target key end

     0   :  { %6 = vsyncpa [#allocation3], 0  ;;  %s1460_s0 = inlined_call_operand.hbm [shape: f32[128,4096], index: 0, kind: input, shape index: {}]   ;;  %s1461_s1 = inlined_call_operand.hbm [shape: bf16[128,4096], index: 1, kind: output, shape index: {}]  }
   0x1   :  { %8 = vsyncpa [#allocation3 + $0x1], 0 }
   0x2   :  { %9 = vsyncpa [#allocation4], 0 }
   0x3   :  { %11 = vsyncpa [#allocation4 + $0x1], 0  ;;  %s1110_s6 = smov 0   ;;  %s1112_s7 = smov 0  }
   0x4   :  { %s1114_s8 = smov 0   ;;  %s1116_s9 = smov 0  }
   0x5 LB: > { %s1131_s10 = sadd.s32 4294967295, %s1092_s9   ;;  %s802_s11 = sadd.s32 4294967294, %s1092_s9   ;;  %s1092_s9 = sphi %s1116_s9, %s1475_s9   ;;  %s1088_s8 = sphi %s1114_s8, %s1474_s8   ;;  %s1084_s7 = sphi %s1112_s7, %s1473_s7   ;;  %s1080_s6 = sphi %s1110_s6, %s1472_s6  }
   0x6   : > { %s1135_s12 = sadd.s32 1, %s1092_s9   ;;  %s24_s13 = sadd.s32 1, %s1088_s8 }
   0x7   : > { %s21_s14 = ssub.s32 %s1092_s9, %s1135_s12  ;;  %p31_p0 = scmp.ne.s32.totalorder %s1088_s8, %s1084_s7 }
   0x8   : > { %p22_p1 = scmp.eq.s32.totalorder %s21_s14, 0  ;;  %p32_p2 = scmp.eq.s32.totalorder %s1092_s9, 0 }
   0x9   : > { %p37_p3 = scmp.ne.s32.totalorder %s1084_s7, %s1080_s6  ;;  %p38_p4 = scmp.eq.s32.totalorder %s1131_s10, 0 }
   0xa   : > { %s1147_s15 = scalar_select %p22_p1, %s1088_s8, %s24_s13  }
   0xb   : > { %p1149_p5 = por %p32_p2, %p31_p0  ;;  %p1153_p6 = por %p38_p4, %p37_p3 }
   0xc   : > { %p61_p7 = scmp.eq.s32.totalorder %s1131_s10, 3  ;;  %p67_p8 = scmp.eq.s32.totalorder %s802_s11, 3 }
   0xd   : > { %s1465_s17 = scalar_select %p1153_p6, 1, 0 }
   0xe   : > { %p962_p9 = scmp.lt.s32.totalorder %s1092_s9, 4  ;;  %p1159_p10 = por %p61_p7, %p31_p0 }
   0xf   : > { %p1163_p11 = por %p67_p8, %p37_p3  ;;  %s87_s20 = sand.u32 1, %s1088_s8  }
  0x10   : > { %s1466_s18 = scalar_select %p1159_p10, 1, 0 }
  0x11   : > { %s1467_s19 = scalar_select %p1163_p11, 1, 0 }
  0x12   : > { %s883_s21 = sshll.u32 %s1092_s9, 14  ;;  %s805_s22 = sshll.u32 %s87_s20, 10 }
  0x13   : > { %s1172_s25 = scalar_lea.hbm %s1460_s0, %s883_s21  ;;  %s91_s26 = scalar_lea.vmem [#allocation2], %s805_s22 }
  0x14   : > { %s99_s27 = sshll.u32 %s91_s26, 4  ;;  %p1176_p12 = pnand %p962_p9, %p1149_p5  ;;  %s1180_s27 = int_to_ptr.vmem [resolvable:$true] %s99_s27 }
  0x15   : > { %s1182_s29 = scalar_lea.sflag [#allocation3], %s87_s20  ;;  %s1000_s30 = scalar_lea.hbm %s1172_s25, 16384 }
  0x16   : > { %p1001_p13 = scmp.ne.s32.totalorder %s1172_s25, %s1000_s30  ;;  %p1002_p0 = pneg %p1176_p12 }
  0x17   : > { %s1005_s4 = scalar_lea.hbm %s1460_s0, 65536  ;;  %p1006_p3 = scmp.lt.s32.totalorder %s1172_s25, %s1460_s0 }
  0x18   : > { %p1003_p1 = pnand %p1002_p0, %p1001_p13  ;;  %p1007_p4 = scmp.lt.s32.totalorder %s1005_s4, %s1000_s30 }
  0x1a   : > { %p1004_p2 = pneg %p1003_p1  ;;  %p1008_p5 = por %p1007_p4, %p1006_p3 }
  0x1c   : > { %p1009_p7 = pnand %p1008_p5, %p1004_p2 }
  0x1e   : > { %1012 = shalt.err (!%p1009_p7)
}
  0x1f   : > { %s1013_s13 = scalar_lea.vmem %s1180_s27, 16384  ;;  %s1094_s14 = smov [#allocation2]  }
  0x20   : > { %p1014_p8 = scmp.ne.s32.totalorder %s1180_s27, %s1013_s13  ;;  %s1018_s16 = sshll.u32 %s1094_s14, 4  ;;  %s1019_s16 = int_to_ptr.vmem [resolvable:$false] %s1018_s16 }
  0x21   : > { %s1020_s20 = scalar_lea.vmem %s1019_s16, 32768  ;;  %p1021_p1 = scmp.lt.s32.totalorder %s1180_s27, %s1019_s16 }
  0x22   : > { %p1016_p9 = pnand %p1014_p8, %p1002_p0  ;;  %p1022_p11 = scmp.lt.s32.totalorder %s1020_s20, %s1013_s13 }
  0x24   : > { %p1017_p13 = pneg %p1016_p9  ;;  %p1023_p10 = por %p1022_p11, %p1021_p1 }
  0x26   : > { %p1024_p6 = pnand %p1023_p10, %p1017_p13 }
  0x28   : > { %1027 = shalt.err (!%p1024_p6)
}
  0x29   : > { %s1095_s21 = smov 4096   ;;  %s1096_s22 = smov 256  }
  0x2a   : > { %957 = dma.hbm_to_vmem [thread:$0]  (!%p1176_p12), %s1172_s25, 16384, %s1180_s27, %s1182_s29, %s1095_s21, %s1095_s21, %s1096_s22  }
  0x2b   : > { %p809_p0 = scmp.ge.s32.totalorder %s1092_s9, 1  ;;  %p107_p2 = scmp.lt.s32.totalorder %s1092_s9, 5 }
  0x2d   : > { %p108_p3 = pnand %p809_p0, %p107_p2 }
  0x2e   : > { %s1206_s23 = sand.u32 (!%p108_p3), 1, %s1084_s7   ;;  %p1469_p6 = scmp.ne.s32.totalorder (!%p108_p3), %s1465_s17, 0 }
  0x2f   : > { %111 = sbr.rel (%p108_p3) target bundleno = 117 (0x75), region = 24  ;;  %s810_s24 = sshll.u32 (!%p108_p3), %s1206_s23, 10 }
  0x30   : > { %s114_s26 = scalar_lea.sflag (!%p108_p3), [#allocation3], %s1206_s23  ;;  %s1210_s30 = scalar_lea.vmem (!%p108_p3), [#allocation2], %s810_s24 }
  0x34   : > { %1071 = dma.done.wait (%p1469_p6), %s114_s26, 16384  }
  0x35   : > { %1073 = vsyncadd (%p1469_p6), %s114_s26, 4294950912  ;;  %s811_s25 = sshll.u32 %s1206_s23, 9  ;;  %v138_v0 = vld [vmem:[%s1210_s30] sm:$0xff]  ;;  %v139_v1 = vld [vmem:[%s1210_s30 + $0x8] sm:$0xff]  ;;  %s949_s27 = sshll.u32 %s1131_s10, 13 }
  0x36   : > { %v140_v2 = vld [vmem:[%s1210_s30 + $0x10] sm:$0xff]  ;;  %v884_v3 = vpack.c.bf16 %v139_v1, %v138_v0  ;;  %v141_v4 = vld [vmem:[%s1210_s30 + $0x18] sm:$0xff]  ;;  %v142_v5 = vld [vmem:[%s1210_s30 + $0x20] sm:$0xff]  ;;  %s1226_s17 = scalar_lea.vmem [#allocation5], %s811_s25  ;;  %s1412_s2 = scalar_lea.hbm %s1461_s1, %s949_s27 }
  0x37   : > { %v143_v6 = vld [vmem:[%s1210_s30 + $0x28] sm:$0xff]  ;;  %v885_v7 = vpack.c.bf16 %v141_v4, %v140_v2  ;;  %v144_v9 = vld [vmem:[%s1210_s30 + $0x30] sm:$0xff]  ;;  %v145_v10 = vld [vmem:[%s1210_s30 + $0x38] sm:$0xff]  ;;  %s729_s28 = sshll.u32 %s1226_s17, 4  ;;  %s715_s3 = scalar_lea.sflag [#allocation4], %s1206_s23  ;;  %s1414_s28 = int_to_ptr.vmem [resolvable:$true] %s729_s28 }
  0x38   : > { %v886_v8 = vpack.c.bf16 %v143_v6, %v142_v5  ;;  %v146_v11 = vld [vmem:[%s1210_s30 + $0x40] sm:$0xff]  ;;  %650 = vst [vmem:[%s1226_s17] sm:$0xff] %v884_v3  ;;  %v887_v12 = vpack.c.bf16 %v145_v10, %v144_v9  ;;  %v147_v13 = vld [vmem:[%s1210_s30 + $0x48] sm:$0xff]  ;;  %v148_v14 = vld [vmem:[%s1210_s30 + $0x50] sm:$0xff]  ;;  %s1028_s4 = scalar_lea.vmem %s1414_s28, 8192  ;;  %p1470_p11 = scmp.ne.s32.totalorder %s1466_s18, 0 }
  0x39   : > { %v149_v15 = vld [vmem:[%s1210_s30 + $0x58] sm:$0xff]  ;;  %651 = vst [vmem:[%s1226_s17 + $0x8] sm:$0xff] %v885_v7  ;;  %v888_v16 = vpack.c.bf16 %v147_v13, %v146_v11  ;;  %v150_v18 = vld [vmem:[%s1210_s30 + $0x60] sm:$0xff]  ;;  %v151_v19 = vld [vmem:[%s1210_s30 + $0x68] sm:$0xff]  ;;  %p1029_p10 = scmp.ne.s32.totalorder %s1414_s28, %s1028_s4  ;;  %s1097_s5 = smov [#allocation5]  }
  0x3a   : > { %652 = vst [vmem:[%s1226_s17 + $0x10] sm:$0xff] %v886_v8  ;;  %v889_v17 = vpack.c.bf16 %v149_v15, %v148_v14  ;;  %v152_v20 = vld [vmem:[%s1210_s30 + $0x70] sm:$0xff]  ;;  %653 = vst [vmem:[%s1226_s17 + $0x18] sm:$0xff] %v887_v12  ;;  %v890_v21 = vpack.c.bf16 %v151_v19, %v150_v18  ;;  %v153_v22 = vld [vmem:[%s1210_s30 + $0x78] sm:$0xff]  ;;  %s1032_s11 = sshll.u32 %s1097_s5, 4  ;;  %s1033_s11 = int_to_ptr.vmem [resolvable:$false] %s1032_s11 }
  0x3b   : > { %v154_v23 = vld [vmem:[%s1210_s30 + $0x80] sm:$0xff]  ;;  %v155_v24 = vld [vmem:[%s1210_s30 + $0x88] sm:$0xff]  ;;  %654 = vst [vmem:[%s1226_s17 + $0x20] sm:$0xff] %v888_v16  ;;  %v891_v25 = vpack.c.bf16 %v153_v22, %v152_v20  ;;  %v156_v27 = vld [vmem:[%s1210_s30 + $0x90] sm:$0xff]  ;;  %p1030_p12 = pnand %p1029_p10, %p1470_p11  ;;  %s1034_s13 = scalar_lea.vmem %s1033_s11, 16384 }
  0x3c   : > { %655 = vst [vmem:[%s1226_s17 + $0x28] sm:$0xff] %v889_v17  ;;  %v892_v26 = vpack.c.bf16 %v155_v24, %v154_v23  ;;  %v157_v28 = vld [vmem:[%s1210_s30 + $0x98] sm:$0xff]  ;;  %v158_v29 = vld [vmem:[%s1210_s30 + $0xa0] sm:$0xff]  ;;  %656 = vst [vmem:[%s1226_s17 + $0x30] sm:$0xff] %v890_v21  ;;  %p1035_p5 = scmp.lt.s32.totalorder %s1414_s28, %s1033_s11  ;;  %p1036_p7 = scmp.lt.s32.totalorder %s1034_s13, %s1028_s4 }
  0x3d   : > { %v893_v30 = vpack.c.bf16 %v157_v28, %v156_v27  ;;  %v159_v31 = vld [vmem:[%s1210_s30 + $0xa8] sm:$0xff]  ;;  %v160_v32 = vld [vmem:[%s1210_s30 + $0xb0] sm:$0xff]  ;;  %v161_v33 = vld [vmem:[%s1210_s30 + $0xb8] sm:$0xff]  ;;  %657 = vst [vmem:[%s1226_s17 + $0x38] sm:$0xff] %v891_v25  ;;  %p1031_p4 = pneg %p1030_p12 }
  0x3e   : > { %658 = vst [vmem:[%s1226_s17 + $0x40] sm:$0xff] %v892_v26  ;;  %v894_v34 = vpack.c.bf16 %v159_v31, %v158_v29  ;;  %v895_v35 = vpack.c.bf16 %v161_v33, %v160_v32  ;;  %v162_v36 = vld [vmem:[%s1210_s30 + $0xc0] sm:$0xff]  ;;  %v163_v37 = vld [vmem:[%s1210_s30 + $0xc8] sm:$0xff]  ;;  %v164_v38 = vld [vmem:[%s1210_s30 + $0xd0] sm:$0xff]  ;;  %p1037_p8 = por %p1036_p7, %p1035_p5 }
  0x3f   : > { %659 = vst [vmem:[%s1226_s17 + $0x48] sm:$0xff] %v893_v30  ;;  %v896_v39 = vpack.c.bf16 %v163_v37, %v162_v36  ;;  %v165_v40 = vld [vmem:[%s1210_s30 + $0xd8] sm:$0xff]  ;;  %v166_v41 = vld [vmem:[%s1210_s30 + $0xe0] sm:$0xff]  ;;  %v167_v42 = vld [vmem:[%s1210_s30 + $0xe8] sm:$0xff] }
  0x40   : > { %660 = vst [vmem:[%s1226_s17 + $0x50] sm:$0xff] %v894_v34  ;;  %661 = vst [vmem:[%s1226_s17 + $0x58] sm:$0xff] %v895_v35  ;;  %v897_v43 = vpack.c.bf16 %v165_v40, %v164_v38  ;;  %v898_v44 = vpack.c.bf16 %v167_v42, %v166_v41  ;;  %v168_v45 = vld [vmem:[%s1210_s30 + $0xf0] sm:$0xff]  ;;  %v169_v46 = vld [vmem:[%s1210_s30 + $0xf8] sm:$0xff]  ;;  %p1038_p9 = pnand %p1037_p8, %p1031_p4 }
  0x41   : > { %v170_v47 = vld [vmem:[%s1210_s30 + $0x100] sm:$0xff]  ;;  %662 = vst [vmem:[%s1226_s17 + $0x60] sm:$0xff] %v896_v39  ;;  %v899_v48 = vpack.c.bf16 %v169_v46, %v168_v45  ;;  %v171_v49 = vld [vmem:[%s1210_s30 + $0x108] sm:$0xff]  ;;  %v172_v50 = vld [vmem:[%s1210_s30 + $0x110] sm:$0xff] }
  0x42   : > { %v173_v51 = vld [vmem:[%s1210_s30 + $0x118] sm:$0xff]  ;;  %663 = vst [vmem:[%s1226_s17 + $0x68] sm:$0xff] %v897_v43  ;;  %664 = vst [vmem:[%s1226_s17 + $0x70] sm:$0xff] %v898_v44  ;;  %v900_v52 = vpack.c.bf16 %v171_v49, %v170_v47  ;;  %v174_v54 = vld [vmem:[%s1210_s30 + $0x120] sm:$0xff] }
  0x43   : > { %v901_v53 = vpack.c.bf16 %v173_v51, %v172_v50  ;;  %v175_v55 = vld [vmem:[%s1210_s30 + $0x128] sm:$0xff]  ;;  %v176_v56 = vld [vmem:[%s1210_s30 + $0x130] sm:$0xff]  ;;  %665 = vst [vmem:[%s1226_s17 + $0x78] sm:$0xff] %v899_v48  ;;  %v177_v58 = vld [vmem:[%s1210_s30 + $0x138] sm:$0xff] }
  0x44   : > { %v902_v57 = vpack.c.bf16 %v175_v55, %v174_v54  ;;  %v178_v59 = vld [vmem:[%s1210_s30 + $0x140] sm:$0xff]  ;;  %v179_v60 = vld [vmem:[%s1210_s30 + $0x148] sm:$0xff]  ;;  %666 = vst [vmem:[%s1226_s17 + $0x80] sm:$0xff] %v900_v52  ;;  %v903_v61 = vpack.c.bf16 %v177_v58, %v176_v56  ;;  %v180_v63 = vld [vmem:[%s1210_s30 + $0x150] sm:$0xff] }
  0x45   : > { %667 = vst [vmem:[%s1226_s17 + $0x88] sm:$0xff] %v901_v53  ;;  %v904_v62 = vpack.c.bf16 %v179_v60, %v178_v59  ;;  %v181_v0 = vld [vmem:[%s1210_s30 + $0x158] sm:$0xff]  ;;  %v182_v1 = vld [vmem:[%s1210_s30 + $0x160] sm:$0xff]  ;;  %v183_v3 = vld [vmem:[%s1210_s30 + $0x168] sm:$0xff] }
  0x46   : > { %668 = vst [vmem:[%s1226_s17 + $0x90] sm:$0xff] %v902_v57  ;;  %v905_v2 = vpack.c.bf16 %v181_v0, %v180_v63  ;;  %v184_v4 = vld [vmem:[%s1210_s30 + $0x170] sm:$0xff]  ;;  %v185_v5 = vld [vmem:[%s1210_s30 + $0x178] sm:$0xff]  ;;  %669 = vst [vmem:[%s1226_s17 + $0x98] sm:$0xff] %v903_v61  ;;  %v906_v6 = vpack.c.bf16 %v183_v3, %v182_v1 }
  0x47   : > { %670 = vst [vmem:[%s1226_s17 + $0xa0] sm:$0xff] %v904_v62  ;;  %v907_v7 = vpack.c.bf16 %v185_v5, %v184_v4  ;;  %v186_v8 = vld [vmem:[%s1210_s30 + $0x180] sm:$0xff]  ;;  %v187_v9 = vld [vmem:[%s1210_s30 + $0x188] sm:$0xff]  ;;  %v188_v10 = vld [vmem:[%s1210_s30 + $0x190] sm:$0xff] }
  0x48   : > { %671 = vst [vmem:[%s1226_s17 + $0xa8] sm:$0xff] %v905_v2  ;;  %v908_v11 = vpack.c.bf16 %v187_v9, %v186_v8  ;;  %v189_v12 = vld [vmem:[%s1210_s30 + $0x198] sm:$0xff]  ;;  %v190_v13 = vld [vmem:[%s1210_s30 + $0x1a0] sm:$0xff]  ;;  %v191_v14 = vld [vmem:[%s1210_s30 + $0x1a8] sm:$0xff] }
  0x49   : > { %672 = vst [vmem:[%s1226_s17 + $0xb0] sm:$0xff] %v906_v6  ;;  %673 = vst [vmem:[%s1226_s17 + $0xb8] sm:$0xff] %v907_v7  ;;  %v909_v15 = vpack.c.bf16 %v189_v12, %v188_v10  ;;  %v910_v16 = vpack.c.bf16 %v191_v14, %v190_v13  ;;  %v192_v17 = vld [vmem:[%s1210_s30 + $0x1b0] sm:$0xff]  ;;  %v193_v18 = vld [vmem:[%s1210_s30 + $0x1b8] sm:$0xff] }
  0x4a   : > { %v194_v19 = vld [vmem:[%s1210_s30 + $0x1c0] sm:$0xff]  ;;  %674 = vst [vmem:[%s1226_s17 + $0xc0] sm:$0xff] %v908_v11  ;;  %v911_v20 = vpack.c.bf16 %v193_v18, %v192_v17  ;;  %v195_v21 = vld [vmem:[%s1210_s30 + $0x1c8] sm:$0xff]  ;;  %v196_v22 = vld [vmem:[%s1210_s30 + $0x1d0] sm:$0xff] }
  0x4b   : > { %v197_v23 = vld [vmem:[%s1210_s30 + $0x1d8] sm:$0xff]  ;;  %675 = vst [vmem:[%s1226_s17 + $0xc8] sm:$0xff] %v909_v15  ;;  %676 = vst [vmem:[%s1226_s17 + $0xd0] sm:$0xff] %v910_v16  ;;  %v912_v24 = vpack.c.bf16 %v195_v21, %v194_v19  ;;  %v198_v26 = vld [vmem:[%s1210_s30 + $0x1e0] sm:$0xff] }
  0x4c   : > { %v913_v25 = vpack.c.bf16 %v197_v23, %v196_v22  ;;  %v199_v27 = vld [vmem:[%s1210_s30 + $0x1e8] sm:$0xff]  ;;  %v200_v28 = vld [vmem:[%s1210_s30 + $0x1f0] sm:$0xff]  ;;  %677 = vst [vmem:[%s1226_s17 + $0xd8] sm:$0xff] %v911_v20  ;;  %v201_v30 = vld [vmem:[%s1210_s30 + $0x1f8] sm:$0xff] }
  0x4d   : > { %v914_v29 = vpack.c.bf16 %v199_v27, %v198_v26  ;;  %v202_v31 = vld [vmem:[%s1210_s30 + $0x200] sm:$0xff]  ;;  %v203_v32 = vld [vmem:[%s1210_s30 + $0x208] sm:$0xff]  ;;  %678 = vst [vmem:[%s1226_s17 + $0xe0] sm:$0xff] %v912_v24  ;;  %v915_v33 = vpack.c.bf16 %v201_v30, %v200_v28  ;;  %v204_v35 = vld [vmem:[%s1210_s30 + $0x210] sm:$0xff] }
  0x4e   : > { %679 = vst [vmem:[%s1226_s17 + $0xe8] sm:$0xff] %v913_v25  ;;  %v916_v34 = vpack.c.bf16 %v203_v32, %v202_v31  ;;  %v205_v36 = vld [vmem:[%s1210_s30 + $0x218] sm:$0xff]  ;;  %v206_v37 = vld [vmem:[%s1210_s30 + $0x220] sm:$0xff]  ;;  %v207_v39 = vld [vmem:[%s1210_s30 + $0x228] sm:$0xff] }
  0x4f   : > { %680 = vst [vmem:[%s1226_s17 + $0xf0] sm:$0xff] %v914_v29  ;;  %v917_v38 = vpack.c.bf16 %v205_v36, %v204_v35  ;;  %v208_v40 = vld [vmem:[%s1210_s30 + $0x230] sm:$0xff]  ;;  %v209_v41 = vld [vmem:[%s1210_s30 + $0x238] sm:$0xff]  ;;  %681 = vst [vmem:[%s1226_s17 + $0xf8] sm:$0xff] %v915_v33  ;;  %v918_v42 = vpack.c.bf16 %v207_v39, %v206_v37 }
  0x50   : > { %682 = vst [vmem:[%s1226_s17 + $0x100] sm:$0xff] %v916_v34  ;;  %v919_v43 = vpack.c.bf16 %v209_v41, %v208_v40  ;;  %v210_v44 = vld [vmem:[%s1210_s30 + $0x240] sm:$0xff]  ;;  %v211_v45 = vld [vmem:[%s1210_s30 + $0x248] sm:$0xff]  ;;  %v212_v46 = vld [vmem:[%s1210_s30 + $0x250] sm:$0xff] }
  0x51   : > { %683 = vst [vmem:[%s1226_s17 + $0x108] sm:$0xff] %v917_v38  ;;  %v920_v47 = vpack.c.bf16 %v211_v45, %v210_v44  ;;  %v213_v48 = vld [vmem:[%s1210_s30 + $0x258] sm:$0xff]  ;;  %v214_v49 = vld [vmem:[%s1210_s30 + $0x260] sm:$0xff]  ;;  %v215_v50 = vld [vmem:[%s1210_s30 + $0x268] sm:$0xff] }
  0x52   : > { %684 = vst [vmem:[%s1226_s17 + $0x110] sm:$0xff] %v918_v42  ;;  %685 = vst [vmem:[%s1226_s17 + $0x118] sm:$0xff] %v919_v43  ;;  %v921_v51 = vpack.c.bf16 %v213_v48, %v212_v46  ;;  %v922_v52 = vpack.c.bf16 %v215_v50, %v214_v49  ;;  %v216_v53 = vld [vmem:[%s1210_s30 + $0x270] sm:$0xff]  ;;  %v217_v54 = vld [vmem:[%s1210_s30 + $0x278] sm:$0xff] }
  0x53   : > { %v218_v55 = vld [vmem:[%s1210_s30 + $0x280] sm:$0xff]  ;;  %686 = vst [vmem:[%s1226_s17 + $0x120] sm:$0xff] %v920_v47  ;;  %v923_v56 = vpack.c.bf16 %v217_v54, %v216_v53  ;;  %v219_v57 = vld [vmem:[%s1210_s30 + $0x288] sm:$0xff]  ;;  %v220_v58 = vld [vmem:[%s1210_s30 + $0x290] sm:$0xff] }
  0x54   : > { %v221_v59 = vld [vmem:[%s1210_s30 + $0x298] sm:$0xff]  ;;  %687 = vst [vmem:[%s1226_s17 + $0x128] sm:$0xff] %v921_v51  ;;  %688 = vst [vmem:[%s1226_s17 + $0x130] sm:$0xff] %v922_v52  ;;  %v924_v60 = vpack.c.bf16 %v219_v57, %v218_v55  ;;  %v222_v62 = vld [vmem:[%s1210_s30 + $0x2a0] sm:$0xff] }
  0x55   : > { %v925_v61 = vpack.c.bf16 %v221_v59, %v220_v58  ;;  %v223_v63 = vld [vmem:[%s1210_s30 + $0x2a8] sm:$0xff]  ;;  %v224_v0 = vld [vmem:[%s1210_s30 + $0x2b0] sm:$0xff]  ;;  %689 = vst [vmem:[%s1226_s17 + $0x138] sm:$0xff] %v923_v56  ;;  %v225_v2 = vld [vmem:[%s1210_s30 + $0x2b8] sm:$0xff] }
  0x56   : > { %v926_v1 = vpack.c.bf16 %v223_v63, %v222_v62  ;;  %v226_v3 = vld [vmem:[%s1210_s30 + $0x2c0] sm:$0xff]  ;;  %v227_v4 = vld [vmem:[%s1210_s30 + $0x2c8] sm:$0xff]  ;;  %690 = vst [vmem:[%s1226_s17 + $0x140] sm:$0xff] %v924_v60  ;;  %v927_v5 = vpack.c.bf16 %v225_v2, %v224_v0  ;;  %v228_v7 = vld [vmem:[%s1210_s30 + $0x2d0] sm:$0xff] }
  0x57   : > { %691 = vst [vmem:[%s1226_s17 + $0x148] sm:$0xff] %v925_v61  ;;  %v928_v6 = vpack.c.bf16 %v227_v4, %v226_v3  ;;  %v229_v8 = vld [vmem:[%s1210_s30 + $0x2d8] sm:$0xff]  ;;  %v230_v9 = vld [vmem:[%s1210_s30 + $0x2e0] sm:$0xff]  ;;  %v231_v11 = vld [vmem:[%s1210_s30 + $0x2e8] sm:$0xff] }
  0x58   : > { %692 = vst [vmem:[%s1226_s17 + $0x150] sm:$0xff] %v926_v1  ;;  %v929_v10 = vpack.c.bf16 %v229_v8, %v228_v7  ;;  %v232_v12 = vld [vmem:[%s1210_s30 + $0x2f0] sm:$0xff]  ;;  %v233_v13 = vld [vmem:[%s1210_s30 + $0x2f8] sm:$0xff]  ;;  %693 = vst [vmem:[%s1226_s17 + $0x158] sm:$0xff] %v927_v5  ;;  %v930_v14 = vpack.c.bf16 %v231_v11, %v230_v9 }
  0x59   : > { %694 = vst [vmem:[%s1226_s17 + $0x160] sm:$0xff] %v928_v6  ;;  %v931_v15 = vpack.c.bf16 %v233_v13, %v232_v12  ;;  %v234_v16 = vld [vmem:[%s1210_s30 + $0x300] sm:$0xff]  ;;  %v235_v17 = vld [vmem:[%s1210_s30 + $0x308] sm:$0xff]  ;;  %v236_v18 = vld [vmem:[%s1210_s30 + $0x310] sm:$0xff] }
  0x5a   : > { %695 = vst [vmem:[%s1226_s17 + $0x168] sm:$0xff] %v929_v10  ;;  %v932_v19 = vpack.c.bf16 %v235_v17, %v234_v16  ;;  %v237_v20 = vld [vmem:[%s1210_s30 + $0x318] sm:$0xff]  ;;  %v238_v21 = vld [vmem:[%s1210_s30 + $0x320] sm:$0xff]  ;;  %v239_v22 = vld [vmem:[%s1210_s30 + $0x328] sm:$0xff] }
  0x5b   : > { %696 = vst [vmem:[%s1226_s17 + $0x170] sm:$0xff] %v930_v14  ;;  %697 = vst [vmem:[%s1226_s17 + $0x178] sm:$0xff] %v931_v15  ;;  %v933_v23 = vpack.c.bf16 %v237_v20, %v236_v18  ;;  %v934_v24 = vpack.c.bf16 %v239_v22, %v238_v21  ;;  %v240_v25 = vld [vmem:[%s1210_s30 + $0x330] sm:$0xff]  ;;  %v241_v26 = vld [vmem:[%s1210_s30 + $0x338] sm:$0xff] }
  0x5c   : > { %v242_v27 = vld [vmem:[%s1210_s30 + $0x340] sm:$0xff]  ;;  %698 = vst [vmem:[%s1226_s17 + $0x180] sm:$0xff] %v932_v19  ;;  %v935_v28 = vpack.c.bf16 %v241_v26, %v240_v25  ;;  %v243_v29 = vld [vmem:[%s1210_s30 + $0x348] sm:$0xff]  ;;  %v244_v30 = vld [vmem:[%s1210_s30 + $0x350] sm:$0xff] }
  0x5d   : > { %v245_v31 = vld [vmem:[%s1210_s30 + $0x358] sm:$0xff]  ;;  %699 = vst [vmem:[%s1226_s17 + $0x188] sm:$0xff] %v933_v23  ;;  %700 = vst [vmem:[%s1226_s17 + $0x190] sm:$0xff] %v934_v24  ;;  %v936_v32 = vpack.c.bf16 %v243_v29, %v242_v27  ;;  %v246_v34 = vld [vmem:[%s1210_s30 + $0x360] sm:$0xff] }
  0x5e   : > { %v937_v33 = vpack.c.bf16 %v245_v31, %v244_v30  ;;  %v247_v35 = vld [vmem:[%s1210_s30 + $0x368] sm:$0xff]  ;;  %v248_v36 = vld [vmem:[%s1210_s30 + $0x370] sm:$0xff]  ;;  %701 = vst [vmem:[%s1226_s17 + $0x198] sm:$0xff] %v935_v28  ;;  %v249_v38 = vld [vmem:[%s1210_s30 + $0x378] sm:$0xff] }
  0x5f   : > { %v938_v37 = vpack.c.bf16 %v247_v35, %v246_v34  ;;  %v250_v39 = vld [vmem:[%s1210_s30 + $0x380] sm:$0xff]  ;;  %v251_v40 = vld [vmem:[%s1210_s30 + $0x388] sm:$0xff]  ;;  %702 = vst [vmem:[%s1226_s17 + $0x1a0] sm:$0xff] %v936_v32  ;;  %v939_v41 = vpack.c.bf16 %v249_v38, %v248_v36  ;;  %v252_v43 = vld [vmem:[%s1210_s30 + $0x390] sm:$0xff] }
  0x60   : > { %703 = vst [vmem:[%s1226_s17 + $0x1a8] sm:$0xff] %v937_v33  ;;  %v940_v42 = vpack.c.bf16 %v251_v40, %v250_v39  ;;  %v253_v44 = vld [vmem:[%s1210_s30 + $0x398] sm:$0xff]  ;;  %v254_v45 = vld [vmem:[%s1210_s30 + $0x3a0] sm:$0xff]  ;;  %v255_v47 = vld [vmem:[%s1210_s30 + $0x3a8] sm:$0xff] }
  0x61   : > { %704 = vst [vmem:[%s1226_s17 + $0x1b0] sm:$0xff] %v938_v37  ;;  %v941_v46 = vpack.c.bf16 %v253_v44, %v252_v43  ;;  %v256_v48 = vld [vmem:[%s1210_s30 + $0x3b0] sm:$0xff]  ;;  %v257_v49 = vld [vmem:[%s1210_s30 + $0x3b8] sm:$0xff]  ;;  %705 = vst [vmem:[%s1226_s17 + $0x1b8] sm:$0xff] %v939_v41  ;;  %v942_v50 = vpack.c.bf16 %v255_v47, %v254_v45 }
  0x62   : > { %706 = vst [vmem:[%s1226_s17 + $0x1c0] sm:$0xff] %v940_v42  ;;  %v943_v51 = vpack.c.bf16 %v257_v49, %v256_v48  ;;  %v258_v52 = vld [vmem:[%s1210_s30 + $0x3c0] sm:$0xff]  ;;  %v259_v53 = vld [vmem:[%s1210_s30 + $0x3c8] sm:$0xff]  ;;  %v260_v54 = vld [vmem:[%s1210_s30 + $0x3d0] sm:$0xff] }
  0x63   : > { %707 = vst [vmem:[%s1226_s17 + $0x1c8] sm:$0xff] %v941_v46  ;;  %v944_v55 = vpack.c.bf16 %v259_v53, %v258_v52  ;;  %v261_v56 = vld [vmem:[%s1210_s30 + $0x3d8] sm:$0xff]  ;;  %v262_v57 = vld [vmem:[%s1210_s30 + $0x3e0] sm:$0xff]  ;;  %v263_v58 = vld [vmem:[%s1210_s30 + $0x3e8] sm:$0xff] }
  0x64   : > { %708 = vst [vmem:[%s1226_s17 + $0x1d0] sm:$0xff] %v942_v50  ;;  %709 = vst [vmem:[%s1226_s17 + $0x1d8] sm:$0xff] %v943_v51  ;;  %v945_v59 = vpack.c.bf16 %v261_v56, %v260_v54  ;;  %v946_v60 = vpack.c.bf16 %v263_v58, %v262_v57  ;;  %v264_v61 = vld [vmem:[%s1210_s30 + $0x3f0] sm:$0xff]  ;;  %v265_v62 = vld [vmem:[%s1210_s30 + $0x3f8] sm:$0xff] }
  0x65   : > { %710 = vst [vmem:[%s1226_s17 + $0x1e0] sm:$0xff] %v944_v55  ;;  %v947_v63 = vpack.c.bf16 %v265_v62, %v264_v61 }
  0x66   : > { %711 = vst [vmem:[%s1226_s17 + $0x1e8] sm:$0xff] %v945_v59  ;;  %712 = vst [vmem:[%s1226_s17 + $0x1f0] sm:$0xff] %v946_v60 }
  0x67   : > { %713 = vst [vmem:[%s1226_s17 + $0x1f8] sm:$0xff] %v947_v63 }
  0x68   : > { %1041 = shalt.err (!%p1038_p9)
}
  0x69   : > { %s1042_s14 = scalar_lea.hbm %s1412_s2, 8192  ;;  %s1046_s21 = scalar_lea.hbm %s1461_s1, 32768 }
  0x6a   : > { %p1043_p13 = scmp.ne.s32.totalorder %s1412_s2, %s1042_s14  ;;  %p1047_p2 = scmp.lt.s32.totalorder %s1412_s2, %s1461_s1 }
  0x6b   : > { %p1048_p3 = scmp.lt.s32.totalorder %s1046_s21, %s1042_s14 }
  0x6c   : > { %p1044_p1 = pnand %p1043_p13, %p1470_p11 }
  0x6d   : > { %p1049_p6 = por %p1048_p3, %p1047_p2 }
  0x6e   : > { %p1045_p0 = pneg %p1044_p1 }
  0x70   : > { %p1050_p10 = pnand %p1049_p6, %p1045_p0 }
  0x72   : > { %1053 = shalt.err (!%p1050_p10)
}
  0x73   : > { %s1098_s26 = smov 2048   ;;  %s1099_s30 = smov 128  }
  0x74   : > { %952 = dma.vmem_to_hbm [thread:$0]  (%p1470_p11), %s1414_s28, 8192, %s1412_s2, %s715_s3, %s1098_s26, %s1098_s26, %s1099_s30  }
  0x75 PF: > { %p963_p12 = scmp.ge.s32.totalorder %s1092_s9, 2  ;;  %s744_s25 = sand.u32 1, %s1080_s6  }
  0x76   : > { %p1471_p4 = scmp.ne.s32.totalorder %s1467_s19, 0  ;;  %s745_s17 = scalar_lea.sflag [#allocation4], %s744_s25 }
  0x78   : > { %p959_p5 = pnand %p963_p12, %p1471_p4 }
  0x7a   : > { %p960_p7 = pneg %p959_p5 }
  0x7c   : > { %1075 = dma.done.wait (%p960_p7), %s745_s17, 8192  }
  0x7d   : > { %1077 = vsyncadd (%p960_p7), %s745_s17, 4294959104  ;;  %p14_p8 = scmp.ge.s32.totalorder %s1135_s12, 6   ;;  %s1472_s6 = smov %s1084_s7 }
  0x7e   : > { %s1473_s7 = smov %s1088_s8  ;;  %s1474_s8 = smov %s1147_s15 }
  0x7f   : > { %s1475_s9 = smov %s1135_s12  ;;  %16 = sbr.rel (!%p14_p8) target bundleno = 5 (0x5), region = 69 }
  0x84   :  { %750 = vsyncpa [#allocation3], 1 }
  0x85   :  { %752 = vsyncpa [#allocation3 + $0x1], 1 }
  0x86   :  { %753 = vsyncpa [#allocation4], 1 }
  0x87   :  { %755 = vsyncpa [#allocation4 + $0x1], 1 }

</bundles_post_ra>
